<compile_context>
chip_gen: v5e
topology: v5e:2x2
jax: 0.10.0
libtpu: 0.0.40
codegen_flags: <defaults>
</compile_context>

<pallas_src>
import numpy as np

import jax
import jax.numpy as jnp
from jax.experimental import pallas as pl
from jax.experimental.pallas import tpu as pltpu


def _mlp_kernel(x_ref, w_ref, b_ref, o_ref):
    # x_ref: (1, C, tn)   w_ref: (E, C)   b_ref: (E, 1)   o_ref: (1, E, tn)
    x = x_ref[0]                                               # (C, tn)
    w = w_ref[...]                                             # (E, C)
    acc = jnp.dot(w, x, preferred_element_type=jnp.float32)    # MXU -> (E, tn) f32
    acc = acc + b_ref[...]                                     # bias broadcast over lanes (VPU)
    o_ref[0] = acc.astype(o_ref.dtype)


def _pick_tile_n(N, C, E, x_itemsize, out_itemsize, vmem_budget=8 << 20):
    """Largest lane-aligned N-tile whose double-buffered x/out blocks fit the
    budget, while keeping >=2 tiles per batch when N allows (pipelining +
    megacore sharding)."""
    if N % 128 != 0:
        # Ragged spatial size: one full-width block (block dim == array dim is legal).
        return N
    per_col = 2 * (C * x_itemsize + E * out_itemsize)          # 2x: double buffering
    tn = (vmem_budget // max(per_col, 1)) // 128 * 128
    tn = max(128, min(tn, N, 1024))
    if N >= 256:
        tn = min(tn, max(128, (N // 2) // 128 * 128))
    return tn


def mlp_forward(x_nchw, weight, bias, *, compute_dtype=jnp.bfloat16,
                out_dtype=jnp.float32):
    """x_nchw: (B, C, H, W); weight: (E, C) [PyTorch nn.Linear]; bias: (E,).
    Returns (B, N=H*W, E), matching MLP.forward."""
    B, C, H, W = x_nchw.shape
    E = weight.shape[0]
    N = H * W

    # (B, C, H, W) -> (B, C, N): pure reshape of contiguous memory (free),
    # unlike the original flatten+transpose which cost a full HBM round trip.
    x_bcn = x_nchw.reshape(B, C, N).astype(compute_dtype)
    w_ec = weight.astype(compute_dtype)                 # (E, C): nn.Linear layout, no transpose
    b_e1 = bias.astype(jnp.float32).reshape(E, 1)       # bias added in f32

    tn = _pick_tile_n(N, C, E,
                      np.dtype(compute_dtype).itemsize,
                      np.dtype(out_dtype).itemsize)
    grid = (B, pl.cdiv(N, tn))

    flops = 2 * B * N * C * E
    bytes_accessed = (x_bcn.size * x_bcn.dtype.itemsize
                      + w_ec.size * w_ec.dtype.itemsize
                      + b_e1.size * b_e1.dtype.itemsize
                      + B * E * N * np.dtype(out_dtype).itemsize)

    out_ben = pl.pallas_call(
        _mlp_kernel,
        out_shape=jax.ShapeDtypeStruct((B, E, N), out_dtype),
        grid_spec=pltpu.PrefetchScalarGridSpec(
            num_scalar_prefetch=0,
            grid=grid,
            in_specs=[
                pl.BlockSpec((1, C, tn), lambda b, n: (b, 0, n)),   # lane-dense x tile
                pl.BlockSpec((E, C), lambda b, n: (0, 0)),          # whole weight, fetched once
                pl.BlockSpec((E, 1), lambda b, n: (0, 0)),          # bias column
            ],
            out_specs=pl.BlockSpec((1, E, tn), lambda b, n: (b, 0, n)),  # lane-dense stores
        ),
        compiler_params=pltpu.CompilerParams(
            dimension_semantics=("parallel", "parallel")),
        cost_estimate=pl.CostEstimate(flops=flops, transcendentals=0,
                                      bytes_accessed=bytes_accessed),
    )(x_bcn, w_ec, b_e1)

    # Match the PyTorch module's (B, N, E) return layout.
    # TODO(synk): SegFormer's decode head immediately permutes back to channels
    # first; callers that can consume (B, E, N) should take out_ben directly
    # and skip this transpose.
    return jnp.transpose(out_ben, (0, 2, 1))


if __name__ == "__main__":
    # Small shapes consistent with the module's forward:
    # input_dim (C) = 4, embed_dim (E) = 32, batch = 2, spatial = 16x16.
    B, C, H, W = 2, 4, 16, 16
    E = 32

    key = jax.random.PRNGKey(0)
    kx, kw, kb = jax.random.split(key, 3)

    x = jax.random.normal(kx, (B, C, H, W), dtype=jnp.float32)
    bound = 1.0 / (C ** 0.5)
    weight = jax.random.uniform(kw, (E, C), minval=-bound, maxval=bound,
                                dtype=jnp.float32)
    bias = jax.random.uniform(kb, (E,), minval=-bound, maxval=bound,
                              dtype=jnp.float32)

    # Reference in plain JAX (same math as the PyTorch module), f32 throughout.
    x_bnc = jnp.transpose(x.reshape(B, C, H * W), (0, 2, 1))
    ref = x_bnc @ weight.T + bias

    # 1) Exact path: f32 in-kernel compute, should match to float tolerance.
    out_f32 = jax.block_until_ready(
        mlp_forward(x, weight, bias, compute_dtype=jnp.float32))
    assert out_f32.shape == (B, H * W, E)
    assert jnp.allclose(out_f32, ref, atol=1e-5, rtol=1e-5)

    # 2) Default fast path: bf16 MXU inputs, f32 accumulation -> loosened tol.
    out_fast = jax.block_until_ready(mlp_forward(x, weight, bias))
    assert out_fast.shape == (B, H * W, E)
    assert jnp.allclose(out_fast, ref, atol=5e-2, rtol=5e-2)

    print("KERNEL_OK")
</pallas_src>

<mosaic_0001>
module attributes {stable_mosaic.version = 11 : i64} {
  func.func @_mlp_kernel(%arg0: i32, %arg1: i32, %arg2: memref<1x4x128xf32, #tpu.memory_space<vmem>>, %arg3: memref<32x4xf32, #tpu.memory_space<vmem>>, %arg4: memref<32x1xf32, #tpu.memory_space<vmem>>, %arg5: memref<1x32x128xf32, #tpu.memory_space<vmem>>) attributes {dimension_semantics = [#tpu.dimension_semantics<parallel>, #tpu.dimension_semantics<parallel>], iteration_bounds = array<i64: 2, 2>, scalar_prefetch = 0 : i64, scratch_operands = 0 : i64, tpu.core_type = #tpu.core_type<tc>, window_params = [{transform_indices = @transform_0, window_bounds = array<i64: 1, 4, 128>}, {pipeline_mode = #tpu.pipeline_mode<synchronous>, transform_indices = @transform_1, window_bounds = array<i64: 32, 4>}, {pipeline_mode = #tpu.pipeline_mode<synchronous>, transform_indices = @transform_2, window_bounds = array<i64: 32, 1>}, {transform_indices = @transform_3, window_bounds = array<i64: 1, 32, 128>}]} {
    %c0 = arith.constant 0 : index
    %c0_0 = arith.constant 0 : index
    %c0_1 = arith.constant 0 : index
    %0 = vector.load %arg2[%c0, %c0_0, %c0_1] : memref<1x4x128xf32, #tpu.memory_space<vmem>>, vector<1x4x128xf32>
    %1 = vector.shape_cast %0 : vector<1x4x128xf32> to vector<4x128xf32>
    %c0_2 = arith.constant 0 : index
    %c0_3 = arith.constant 0 : index
    %2 = vector.load %arg3[%c0_2, %c0_3] : memref<32x4xf32, #tpu.memory_space<vmem>>, vector<32x4xf32>
    %cst = arith.constant dense<0.000000e+00> : vector<32x128xf32>
    %3 = tpu.matmul %2, %1, %cst {dimension_numbers = #tpu.dot_dimension_numbers<[1], [0], [0], [1], [0, 0, 1, 1], [], []>} : vector<32x4xf32>, vector<4x128xf32>, vector<32x128xf32> -> vector<32x128xf32>
    %c0_4 = arith.constant 0 : index
    %c0_5 = arith.constant 0 : index
    %4 = vector.load %arg4[%c0_4, %c0_5] : memref<32x1xf32, #tpu.memory_space<vmem>>, vector<32x1xf32>
    %5 = vector.broadcast %4 : vector<32x1xf32> to vector<32x128xf32>
    %6 = arith.addf %3, %5 : vector<32x128xf32>
    %c0_6 = arith.constant 0 : index
    %c0_7 = arith.constant 0 : index
    %c0_8 = arith.constant 0 : index
    %7 = vector.load %arg5[%c0_6, %c0_7, %c0_8] : memref<1x32x128xf32, #tpu.memory_space<vmem>>, vector<1x32x128xf32>
    %8 = vector.shape_cast %7 : vector<1x32x128xf32> to vector<32x128xf32>
    %9 = vector.shape_cast %6 : vector<32x128xf32> to vector<1x32x128xf32>
    tpu.vector_store %arg5[%c0_6, %c0_7, %c0_8], %9 {strides = array<i32>} : memref<1x32x128xf32, #tpu.memory_space<vmem>>, vector<1x32x128xf32>,
    return
  }
  func.func @transform_0(%arg0: i32, %arg1: i32) -> (i32, i32, i32) {
    %c0_i32 = arith.constant 0 : i32
    %c0_i32_0 = arith.constant 0 : i32
    return %arg0, %c0_i32, %arg1 : i32, i32, i32
  }
  func.func @transform_1(%arg0: i32, %arg1: i32) -> (i32, i32) {
    %c0_i32 = arith.constant 0 : i32
    %c0_i32_0 = arith.constant 0 : i32
    %c0_i32_1 = arith.constant 0 : i32
    return %c0_i32, %c0_i32_0 : i32, i32
  }
  func.func @transform_2(%arg0: i32, %arg1: i32) -> (i32, i32) {
    %c0_i32 = arith.constant 0 : i32
    %c0_i32_0 = arith.constant 0 : i32
    %c0_i32_1 = arith.constant 0 : i32
    return %c0_i32, %c0_i32_0 : i32, i32
  }
  func.func @transform_3(%arg0: i32, %arg1: i32) -> (i32, i32, i32) {
    %c0_i32 = arith.constant 0 : i32
    %c0_i32_0 = arith.constant 0 : i32
    return %arg0, %c0_i32, %arg1 : i32, i32, i32
  }
}

</mosaic_0001>

<bundles_post_ra>
// kernel: tpu_custom_call.1
= control target key start
LH: loop header
LB: loop body
LE: loop exit
PB: predicated region body
PF: predicated region fallthrough
CT: control target
= control target key end

     0   :  { %8 = vsyncpa [#allocation3], 0  ;;  %s735_s0 = inlined_call_operand.vmem [shape: f32[2,4,256], index: 0, kind: input, shape index: {}]   ;;  %s736_s1 = inlined_call_operand.vmem [shape: f32[32,4], index: 1, kind: input, shape index: {}]   ;;  %s737_s2 = inlined_call_operand.vmem [shape: f32[32,1], index: 2, kind: input, shape index: {}]   ;;  %s738_s3 = inlined_call_operand.hbm [shape: f32[2,32,256], index: 3, kind: output, shape index: {}]  }
   0x1   :  { %10 = vsyncpa [#allocation3 + $0x1], 0  ;;  %s589_s12 = smov 0   ;;  %s591_s13 = smov 0  }
   0x2   :  { %s593_s14 = smov 0   ;;  %s595_s15 = smov 0  }
   0x3   :  { %s597_s16 = smov 0   ;;  %s599_s17 = smov 0  }
   0x4   :  { %s601_s18 = smov 0   ;;  %s603_s19 = smov 0  }
   0x5 LB: > { %s371_s20 = sadd.s32 4294967295, %s563_s19   ;;  %s372_s21 = sadd.s32 4294967294, %s563_s19   ;;  %s563_s19 = sphi %s603_s19, %s16_s19   ;;  %s559_s18 = sphi %s601_s18, %s747_s18   ;;  %s555_s17 = sphi %s599_s17, %s746_s17   ;;  %s551_s16 = sphi %s597_s16, %s745_s16   ;;  %s547_s15 = sphi %s595_s15, %s744_s15   ;;  %s543_s14 = sphi %s593_s14, %s743_s14   ;;  %s539_s13 = sphi %s591_s13, %s742_s13   ;;  %s535_s12 = sphi %s589_s12, %s741_s12  }
   0x6   : > { %s25_s22 = sadd.s32 1, %s555_s17  ;;  %s28_s23 = sadd.s32 1, %s559_s18 }
   0x7   : > { %p26_p0 = scmp.ge.s32.totalorder %s25_s22, 2  ;;  %p117_p1 = scmp.ne.s32.totalorder %s543_s14, %s539_s13 }
   0x8   : > { %p118_p2 = scmp.eq.s32.totalorder %s371_s20, 3  ;;  %p123_p5 = scmp.ne.s32.totalorder %s539_s13, %s535_s12 }
   0x9   : > { %s749_s22 = smov (%p26_p0, %s25_s22), 0  ;;  %s751_s23 = smov (!%p26_p0, %s28_s23), %s559_s18 }
   0xa   : > { %s103_s24 = ssub.s32 %s555_s17, %s749_s22  ;;  %p640_p3 = por %p118_p2, %p117_p1 }
   0xb   : > { %p30_p4 = scmp.ge.s32.totalorder %s751_s23, 2  ;;  %p124_p6 = scmp.eq.s32.totalorder %s372_s21, 3 }
   0xc   : > { %p375_p7 = scmp.ge.s32.totalorder %s563_s19, 1  ;;  %p159_p9 = scmp.lt.s32.totalorder %s563_s19, 5 }
   0xd   : > { %s753_s23 = smov (%p30_p4, %s751_s23), 0  ;;  %p649_p8 = por %p124_p6, %p123_p5 }
   0xe   : > { %s102_s27 = ssub.s32 %s559_s18, %s753_s23  ;;  %s107_s28 = sadd.s32 1, %s543_s14 }
   0xf   : > { %s104_s29 = sor.u32 %s103_s24, %s102_s27  ;;  %p160_p10 = pnand %p375_p7, %p159_p9 }
  0x10   : > { %p105_p11 = scmp.eq.s32.totalorder %s104_s29, 0  ;;  %p186_p12 = scmp.lt.s32.totalorder (!%p160_p10), %s551_s16, 1 }
  0x11   : > { %163 = sbr.rel (%p160_p10) target bundleno = 172 (0xac), region = 32  ;;  %p188_p13 = scmp.lt.s32.totalorder (!%p160_p10), %s547_s15, 1 }
  0x12   : > { %s658_s30 = scalar_select %p105_p11, %s543_s14, %s107_s28  }
  0x13   : > { %s385_s24 = sshll.u32 (!%p160_p10), %s551_s16, 3 }
  0x14   : > { %s284_s28 = sadd.s32 (!%p160_p10), %s547_s15, %s385_s24  ;;  %s489_s24 = scalar_lea.hbm (!%p160_p10), %s738_s3, 128 }
  0x15   : > { %s386_s5 = sshll.u32 (!%p160_p10), %s284_s28, 3 }
  0x16   : > { %v565_v0 = vmov 0   ;;  %s187_s4 = scalar_select %p186_p12, %s551_s16, 1  ;;  %v201_v1 = vld [vmem:[%s737_s2 + $0x10] sm:$0xff]  ;;  %v199_v2 = vld [vmem:[%s737_s2] sm:$0xff]  ;;  %vm236_vm0 = vcmask 1043456   ;;  %vm223_vm1 = vcmask 31744  }
  0x17   : > { %468 = vset.pattern.permute.xlu1 %v565_v0  ;;  %467 = vset.pattern.permute.xlu0 %v565_v0  ;;  %s189_s9 = scalar_select %p188_p13, %s547_s15, 1  ;;  %v195_v4 = vld [vmem:[%s736_s1] sm:$0xff]  ;;  %v196_v5 = vld [vmem:[%s736_s1 + $0x8] sm:$0xff]  ;;  %v197_v6 = vld [vmem:[%s736_s1 + $0x10] sm:$0xff] }
  0x18   : > { %215 = vperm.xlu1 %468, %v201_v1   ;;  %205 = vperm.xlu0 %467, %v199_v2   ;;  %s377_s10 = sshll.u32 %s187_s4, 1  ;;  %v198_v7 = vld [vmem:[%s736_s1 + $0x18] sm:$0xff]  ;;  %v200_v9 = vld [vmem:[%s737_s2 + $0x8] sm:$0xff]  ;;  %s286_s7 = scalar_lea.hbm %s738_s3, %s386_s5 }
  0x19   : > { %s191_s11 = sadd.s32 %s377_s10, %s189_s9  ;;  %v202_v8 = vld [vmem:[%s737_s2 + $0x18] sm:$0xff]  ;;  %s289_s16 = sshll.u32 %s286_s7, 4  ;;  %s290_s16 = int_to_ptr.hbm [resolvable:$true] %s289_s16 }
  0x1a   : > { %s378_s20 = sshll.u32 %s191_s11, 2  ;;  %s483_s10 = sshra.s32 %s290_s16, 4  ;;  %s484_s10 = int_to_ptr.hbm [resolvable:$true] %s483_s10 }
  0x1b   : > { %s193_s27 = scalar_lea.vmem %s735_s0, %s378_s20  ;;  %s485_s11 = scalar_lea.hbm %s484_s10, 32 }
  0x1c   : > { %v194_v3 = vld [vmem:[%s193_s27] sm:$0xf]  ;;  %s183_s27 = sand.u32 1, %s539_s13   ;;  %p486_p0 = scmp.ne.s32.totalorder %s484_s10, %s485_s11 }
  0x1d   : > { %379 = vmatpush.msk.msra.mxu0 %vm236_vm0, %v194_v3  ;;  %389 = vmatpush.msk.msra.mxu1 %vm236_vm0, %v194_v3  ;;  %s376_s29 = sshll.u32 %s183_s27, 5  ;;  %s274_s15 = scalar_lea.sflag [#allocation3], %s183_s27 }
  0x1e   : > { %390 = vmatpush.msk.msra.mxu2 %vm236_vm0, %v194_v3  ;;  %391 = vmatpush.msk.msra.mxu3 %vm236_vm0, %v194_v3  ;;  %s185_s8 = scalar_lea.vmem [#allocation2], %s376_s29  ;;  %p487_p1 = pnand %p486_p0, %p640_p3 }
  0x1f   : > { %380 = vmatmul.msk.f32.vlgmr.msra.gmra.mxu0 %vm223_vm1, %v195_v4  ;;  %381 = vmatmul.msk.f32.vlgmr.msra.gmra.mxu1 %vm223_vm1, %v196_v5  ;;  %s287_s9 = sshll.u32 %s185_s8, 4  ;;  %p490_p4 = scmp.lt.s32.totalorder %s484_s10, %s738_s3  ;;  %s288_s9 = int_to_ptr.vmem [resolvable:$true] %s287_s9 }
  0x20   : > { %382 = vmatmul.msk.f32.vlgmr.msra.gmra.mxu2 %vm223_vm1, %v197_v6  ;;  %383 = vmatmul.msk.f32.vlgmr.msra.gmra.mxu3 %vm223_vm1, %v198_v7  ;;  %p488_p2 = pneg %p487_p1  ;;  %p491_p5 = scmp.lt.s32.totalorder %s489_s24, %s485_s11 }
  0x21   : > { %220 = vperm.xlu1 %468, %v202_v8   ;;  %210 = vperm.xlu0 %467, %v200_v9  }
  0x22   : > { %p492_p6 = por %p491_p5, %p490_p4 }
  0x24   : > { %p493_p7 = pnand %p492_p6, %p488_p2 }
  0x8a   : > { %v206_v10 = vpop.permute.xlu0 %205  ;;  %v216_v11 = vpop.permute.xlu1 %215 }
  0x93   : > { %v211_v12 = vpop.permute.xlu0 %210  ;;  %v221_v17 = vpop.permute.xlu1 %220 }
  0x9c   : > { %v257_v13 = vpop.f32.mrf.mxu0  ;;  %v260_v14 = vpop.f32.mrf.mxu1 }
  0x9d   : > { %v258_v15 = vadd.f32 %v257_v13, %v206_v10  ;;  %v261_v16 = vadd.f32 %v260_v14, %v211_v12 }
  0x9f   : > { %269 = vst [vmem:[%s185_s8] sm:$0xff] %v258_v15 }
  0xa0   : > { %270 = vst [vmem:[%s185_s8 + $0x8] sm:$0xff] %v261_v16 }
  0xa3   : > { %v263_v18 = vpop.f32.mrf.mxu2  ;;  %v266_v19 = vpop.f32.mrf.mxu3 }
  0xa4   : > { %v264_v20 = vadd.f32 %v263_v18, %v216_v11  ;;  %v267_v21 = vadd.f32 %v266_v19, %v221_v17 }
  0xa6   : > { %271 = vst [vmem:[%s185_s8 + $0x10] sm:$0xff] %v264_v20 }
  0xa7   : > { %272 = vst [vmem:[%s185_s8 + $0x18] sm:$0xff] %v267_v21 }
  0xa8   : > { %496 = shalt.err (!%p493_p7)
}
  0xa9   : > { %s566_s27 = smov 128   ;;  %s567_s5 = smov 256  }
  0xaa   : > { %s568_s6 = smov 8  }
  0xab   : > { %392 = dma.vmem_to_hbm [thread:$0]  (%p640_p3), %s288_s9, 512, %s290_s16, %s274_s15, %s566_s27, %s567_s5, %s568_s6  }
  0xac PF: > { %p398_p9 = scmp.ge.s32.totalorder %s563_s19, 2  ;;  %s304_s4 = sand.u32 1, %s535_s12  }
  0xad   : > { %s305_s7 = scalar_lea.sflag [#allocation3], %s304_s4 }
  0xae   : > { %p395_p10 = pnand %p398_p9, %p649_p8 }
  0xb0   : > { %p396_p11 = pneg %p395_p10 }
  0xb2   : > { %530 = dma.done.wait (%p396_p11), %s305_s7, 512  }
  0xb3   : > { %532 = vsyncadd (%p396_p11), %s305_s7, 4294966784  ;;  %s16_s19 = sadd.s32 1, %s563_s19   ;;  %s741_s12 = smov %s539_s13 }
  0xb4   : > { %p13_p12 = scmp.ge.s32.totalorder %s16_s19, 6   ;;  %s742_s13 = smov %s543_s14 }
  0xb5   : > { %s743_s14 = smov %s658_s30  ;;  %s744_s15 = smov %s555_s17 }
  0xb6   : > { %s745_s16 = smov %s559_s18  ;;  %s746_s17 = smov %s749_s22 }
  0xb7   : > { %s747_s18 = smov %s753_s23  ;;  %15 = sbr.rel (!%p13_p12) target bundleno = 5 (0x5), region = 67 }
  0xbc   :  { %311 = vsyncpa [#allocation3], 1 }
  0xbd   :  { %313 = vsyncpa [#allocation3 + $0x1], 1 }

</bundles_post_ra>
